<compile_context>
chip_gen: v7x
topology: tpu7x:2x2x1
jax: 0.10.0
libtpu: 0.0.40
codegen_flags: <defaults>
</compile_context>

<pallas_src>
import functools

import jax
import jax.numpy as jnp
from jax.experimental import pallas as pl
from jax.experimental.pallas import tpu as pltpu


def _ls_ce_kernel(pred_ref, tgt_ref, out_ref, *, smoothing, n_valid, block_rows):
    pred = pred_ref[...].astype(jnp.float32)            # (TN, C)  one-time f32 cast
    tgt = tgt_ref[...]                                   # (TN, 1) int32
    tn, c = pred.shape

    # Numerically stable logsumexp pieces over the class axis.
    m = jnp.max(pred, axis=1, keepdims=True)             # (TN, 1)
    shifted = pred - m                                    # (TN, C)
    lse = jnp.log(jnp.sum(jnp.exp(shifted), axis=1, keepdims=True))  # (TN, 1)

    # sum_j log_softmax = sum_j shifted - C * lse     (no (TN,C) log_preds temp)
    sum_logp = jnp.sum(shifted, axis=1, keepdims=True) - jnp.float32(c) * lse

    # log_softmax at the target class: masked select-sum (exactly one hit/row).
    class_ids = jax.lax.broadcasted_iota(jnp.int32, (tn, c), 1)
    shifted_tgt = jnp.sum(
        jnp.where(class_ids == tgt, shifted, jnp.float32(0.0)),
        axis=1, keepdims=True)
    logp_tgt = shifted_tgt - lse                          # (TN, 1)

    # Note: smoothing / (C - 1) is undefined for C == 1 (same as the PyTorch
    # module); the wrapper documents/guards this.
    off = jnp.float32(smoothing / (c - 1))
    on = jnp.float32(1.0 - smoothing)
    loss = -(on - off) * logp_tgt - off * sum_logp        # (TN, 1)

    # Mask padded rows of the last partial tile so the outside mean is exact.
    row0 = pl.program_id(0) * block_rows
    row_ids = row0 + jax.lax.broadcasted_iota(jnp.int32, (tn, 1), 0)
    loss = jnp.where(row_ids < n_valid, loss, jnp.float32(0.0))

    out_ref[...] = loss


def label_smoothing_cross_entropy(pred, target, smoothing=0.05, block_rows=None):
    """Pallas TPU implementation of LabelSmoothingCrossEntropy.forward.

    pred:   (N, C) float (f32 or bf16 accepted directly — no wrapper cast).
    target: (N,)   int class ids in [0, C).
    """
    n, c = pred.shape
    if c < 2:
        raise ValueError("LabelSmoothingCrossEntropy requires at least 2 classes.")

    itemsize = jnp.dtype(pred.dtype).itemsize
    tgt2d = target.astype(jnp.int32).reshape(n, 1)

    # --- choose batch tile: multiple of 8, 2x(TN*C*itemsize) <= ~24 MiB -----
    if block_rows is None:
        budget = 24 * (1 << 20)                     # 2 pred buffers combined
        tn = budget // (2 * c * itemsize)
        tn = int(max(8, min(1024, (tn // 8) * 8)))
    else:
        tn = int(block_rows)
    n_up8 = pl.cdiv(n, 8) * 8
    tn = min(tn, n_up8)

    num_tiles = pl.cdiv(n, tn)
    n_pad = num_tiles * tn
    if n_pad != n:
        pred = jnp.pad(pred, ((0, n_pad - n), (0, 0)))
        tgt2d = jnp.pad(tgt2d, ((0, n_pad - n), (0, 0)))

    # --- VMEM budget: 2x double-buffered (pred + tgt + out) tiles + slack ---
    tile_bytes = tn * c * itemsize + tn * 4 + tn * 4
    vmem_limit = int(min(48 * (1 << 20), max(8 * (1 << 20), 2 * tile_bytes + (4 << 20))))

    cost = pl.CostEstimate(
        flops=8 * n * c,
        transcendentals=n * c,
        bytes_accessed=n_pad * c * itemsize + 2 * n_pad * 4,
    )

    kernel = functools.partial(
        _ls_ce_kernel, smoothing=float(smoothing), n_valid=n, block_rows=tn)

    per_row = pl.pallas_call(
        kernel,
        out_shape=jax.ShapeDtypeStruct((n_pad, 1), jnp.float32),
        grid_spec=pltpu.PrefetchScalarGridSpec(
            num_scalar_prefetch=0,
            grid=(num_tiles,),
            in_specs=[
                pl.BlockSpec((tn, c), lambda i: (i, 0)),   # pred tile
                pl.BlockSpec((tn, 1), lambda i: (i, 0)),   # target tile
            ],
            out_specs=pl.BlockSpec((tn, 1), lambda i: (i, 0)),
        ),
        compiler_params=pltpu.CompilerParams(
            dimension_semantics=("parallel",),
            vmem_limit_bytes=vmem_limit,
        ),
        cost_estimate=cost,
    )(pred, tgt2d)

    # Final tiny reduction in plain JAX: sum of (already masked) per-row losses
    # divided by the true batch size.
    return jnp.sum(per_row) / jnp.float32(n)


def _reference(pred, target, smoothing=0.05):
    # Pure-JAX reference mirroring the PyTorch module.
    n_classes = pred.shape[1]
    log_preds = jax.nn.log_softmax(pred.astype(jnp.float32), axis=1)
    true_dist = jnp.full_like(log_preds, smoothing / (n_classes - 1))
    onehot = jax.nn.one_hot(target, n_classes, dtype=log_preds.dtype)
    true_dist = jnp.where(onehot > 0, 1.0 - smoothing, true_dist)
    return jnp.mean(jnp.sum(-true_dist * log_preds, axis=1))


if __name__ == "__main__":
    key = jax.random.PRNGKey(0)
    k1, k2, k3, k4 = jax.random.split(key, 4)

    # Case 1: small aligned shapes, f32 input, single tile.
    N, C = 8, 32
    pred = jax.random.normal(k1, (N, C), dtype=jnp.float32)
    target = jax.random.randint(k2, (N,), 0, C, dtype=jnp.int32)
    loss = jax.block_until_ready(label_smoothing_cross_entropy(pred, target, 0.05))
    ref = _reference(pred, target, 0.05)
    assert jnp.allclose(loss, ref, rtol=1e-5, atol=1e-5), (loss, ref)

    # Case 2: N not a multiple of the tile, bf16 input, multi-tile grid
    # (exercises padded-row masking and the grid reduction).
    N2, C2 = 13, 32
    pred2 = jax.random.normal(k3, (N2, C2), dtype=jnp.bfloat16)
    target2 = jax.random.randint(k4, (N2,), 0, C2, dtype=jnp.int32)
    loss2 = jax.block_until_ready(
        label_smoothing_cross_entropy(pred2, target2, 0.05, block_rows=8))
    ref2 = _reference(pred2, target2, 0.05)
    assert jnp.allclose(loss2, ref2, rtol=1e-5, atol=1e-5), (loss2, ref2)

    print("KERNEL_OK")
</pallas_src>

<mosaic_0001>
module attributes {stable_mosaic.version = 11 : i64} {
  func.func @_ls_ce_kernel(%arg0: i32, %arg1: memref<8x32xf32, #tpu.memory_space<vmem>>, %arg2: memref<8x1xi32, #tpu.memory_space<vmem>>, %arg3: memref<8x1xf32, #tpu.memory_space<vmem>>) attributes {dimension_semantics = [#tpu.dimension_semantics<parallel>], iteration_bounds = array<i64: 1>, scalar_prefetch = 0 : i64, scratch_operands = 0 : i64, tpu.core_type = #tpu.core_type<tc>, window_params = [{transform_indices = @transform_0, window_bounds = array<i64: 8, 32>}, {transform_indices = @transform_1, window_bounds = array<i64: 8, 1>}, {transform_indices = @transform_2, window_bounds = array<i64: 8, 1>}]} {
    %c0 = arith.constant 0 : index
    %c0_0 = arith.constant 0 : index
    %0 = vector.load %arg1[%c0, %c0_0] : memref<8x32xf32, #tpu.memory_space<vmem>>, vector<8x32xf32>
    %c0_1 = arith.constant 0 : index
    %c0_2 = arith.constant 0 : index
    %1 = vector.load %arg2[%c0_1, %c0_2] : memref<8x1xi32, #tpu.memory_space<vmem>>, vector<8x1xi32>
    %cst = arith.constant dense<0xFF800000> : vector<8xf32>
    %2 = vector.multi_reduction <maximumf>, %0, %cst [1] : vector<8x32xf32> to vector<8xf32>
    %3 = vector.shape_cast %2 : vector<8xf32> to vector<8x1xf32>
    %4 = vector.broadcast %3 : vector<8x1xf32> to vector<8x32xf32>
    %5 = arith.subf %0, %4 : vector<8x32xf32>
    %6 = math.exp %5 : vector<8x32xf32>
    %cst_3 = arith.constant dense<0.000000e+00> : vector<8xf32>
    %7 = vector.multi_reduction <add>, %6, %cst_3 [1] : vector<8x32xf32> to vector<8xf32>
    %8 = vector.shape_cast %7 : vector<8xf32> to vector<8x1xf32>
    %9 = math.log %8 : vector<8x1xf32>
    %cst_4 = arith.constant dense<0.000000e+00> : vector<8xf32>
    %10 = vector.multi_reduction <add>, %5, %cst_4 [1] : vector<8x32xf32> to vector<8xf32>
    %11 = vector.shape_cast %10 : vector<8xf32> to vector<8x1xf32>
    %cst_5 = arith.constant 3.200000e+01 : f32
    %12 = vector.broadcast %cst_5 : f32 to vector<8x1xf32>
    %13 = arith.mulf %12, %9 : vector<8x1xf32>
    %14 = arith.subf %11, %13 : vector<8x1xf32>
    %15 = tpu.iota {dimensions = array<i32: 1>} : vector<8x32xi32>
    %16 = vector.broadcast %1 : vector<8x1xi32> to vector<8x32xi32>
    %17 = arith.cmpi eq, %15, %16 : vector<8x32xi32>
    %cst_6 = arith.constant 0.000000e+00 : f32
    %18 = vector.broadcast %cst_6 : f32 to vector<8x32xf32>
    %19 = arith.select %17, %5, %18 : vector<8x32xi1>, vector<8x32xf32>
    %cst_7 = arith.constant dense<0.000000e+00> : vector<8xf32>
    %20 = vector.multi_reduction <add>, %19, %cst_7 [1] : vector<8x32xf32> to vector<8xf32>
    %21 = vector.shape_cast %20 : vector<8xf32> to vector<8x1xf32>
    %22 = arith.subf %21, %9 : vector<8x1xf32>
    %cst_8 = arith.constant 0.949999988 : f32
    %cst_9 = arith.constant 0.0016129032 : f32
    %23 = arith.subf %cst_8, %cst_9 : f32
    %cst_10 = arith.constant 0.000000e+00 : f32
    %24 = arith.subf %cst_10, %23 : f32
    %25 = vector.broadcast %24 : f32 to vector<8x1xf32>
    %26 = arith.mulf %25, %22 : vector<8x1xf32>
    %cst_11 = arith.constant 0.0016129032 : f32
    %27 = vector.broadcast %cst_11 : f32 to vector<8x1xf32>
    %28 = arith.mulf %27, %14 : vector<8x1xf32>
    %29 = arith.subf %26, %28 : vector<8x1xf32>
    %c8_i32 = arith.constant 8 : i32
    %30 = arith.muli %arg0, %c8_i32 : i32
    %31 = tpu.iota {dimensions = array<i32: 0>} : vector<8x1xi32>
    %32 = vector.broadcast %30 : i32 to vector<8x1xi32>
    %33 = arith.addi %32, %31 : vector<8x1xi32>
    %c8_i32_12 = arith.constant 8 : i32
    %34 = vector.broadcast %c8_i32_12 : i32 to vector<8x1xi32>
    %35 = arith.cmpi slt, %33, %34 : vector<8x1xi32>
    %cst_13 = arith.constant 0.000000e+00 : f32
    %36 = vector.broadcast %cst_13 : f32 to vector<8x1xf32>
    %37 = arith.select %35, %29, %36 : vector<8x1xi1>, vector<8x1xf32>
    %c0_14 = arith.constant 0 : index
    %c0_15 = arith.constant 0 : index
    %38 = vector.load %arg3[%c0_14, %c0_15] : memref<8x1xf32, #tpu.memory_space<vmem>>, vector<8x1xf32>
    tpu.vector_store %arg3[%c0_14, %c0_15], %37 {strides = array<i32>} : memref<8x1xf32, #tpu.memory_space<vmem>>, vector<8x1xf32>,
    return
  }
  func.func @transform_0(%arg0: i32) -> (i32, i32) {
    %c0_i32 = arith.constant 0 : i32
    %c0_i32_0 = arith.constant 0 : i32
    return %arg0, %c0_i32 : i32, i32
  }
  func.func @transform_1(%arg0: i32) -> (i32, i32) {
    %c0_i32 = arith.constant 0 : i32
    %c0_i32_0 = arith.constant 0 : i32
    return %arg0, %c0_i32 : i32, i32
  }
  func.func @transform_2(%arg0: i32) -> (i32, i32) {
    %c0_i32 = arith.constant 0 : i32
    %c0_i32_0 = arith.constant 0 : i32
    return %arg0, %c0_i32 : i32, i32
  }
}

</mosaic_0001>

<bundles_post_ra>
// kernel: tpu_custom_call.1
= control target key start
LH: loop header
LB: loop body
LE: loop exit
PB: predicated region body
PF: predicated region fallthrough
CT: control target
= control target key end

     0   :  { %vm13_vm0 = vcmask 261120   ;;  %v63_v1 = vmov 0   ;;  %v30_v7 = vlaneseq  ;;  %vm51_vm2 = vcmask 7168   ;;  %s92_s0 = inlined_call_operand.vmem [shape: f32[8,32], index: 0, kind: input, shape index: {}]   ;;  %s93_s1 = inlined_call_operand.vmem [shape: s32[8,1], index: 1, kind: input, shape index: {}]   ;;  %s94_s2 = inlined_call_operand.vmem [shape: f32[8,1], index: 2, kind: output, shape index: {}]  }
   0x1   :  { %v11_v0 = vld [vmem:[%s92_s0] sm:$0xff]  ;;  %58 = vset.pattern.permute.xlu0 %v63_v1 }
   0x2   :  { %v14_v2 = vsel %vm13_vm0, %v11_v0, -inf  ;;  %v12_v3 = vld [vmem:[%s93_s1] sm:$0xff]  ;;  %v31_v8 = vand.u32 127, %v30_v7 }
   0x3   :  { %15 = vmax.xlane.f32.xlu0 %v14_v2 }
  0x19   :  { %33 = vperm.xlu0 %58, %v12_v3  }
  0x90   :  { %v16_v4 = vpop.xlane.xlu0 %15 }
  0x91   :  { %v17_v5 = vsub.f32 %v11_v0, %v16_v4 }
  0x93   :  { %v18_v6 = vmul.f32 1.442695, %v17_v5  ;;  %v25_v12 = vsel %vm13_vm0, %v17_v5, 0.0 }
  0x95   :  { %59 = vpow2.f32 %v18_v6 }
  0x98   :  { %v34_v10 = vpop.permute.xlu0 %33 }
  0x99   :  { %vm35_vm1 = vcmp.eq.s32.totalorder %v31_v8, %v34_v10 }
  0x9a   :  { %v36_v13 = vsel %vm35_vm1, %v17_v5, 0.0 }
  0x9b   :  { %v37_v14 = vsel %vm13_vm0, %v36_v13, 0.0 }
  0x9f   :  { %v60_v9 = vpop.eup %59 }
  0xa0   :  { %v20_v11 = vsel %vm13_vm0, %v60_v9, 0.0 }
  0xa1   :  { %21 = vadd.xlane.f32.xlu1 %v20_v11 }
  0xa5   :  { %26 = vadd.xlane.f32.xlu1 %v25_v12 }
  0xa9   :  { %38 = vadd.xlane.f32.xlu1 %v37_v14 }
 0x12e   :  { %v22_v15 = vpop.xlane.xlu1 %21 }
 0x12f   :  { %61 = vlog2.f32 %v22_v15 }
 0x132   :  { %v27_v16 = vpop.xlane.xlu1 %26 }
 0x136   :  { %v39_v19 = vpop.xlane.xlu1 %38 }
 0x139   :  { %v62_v17 = vpop.eup %61 }
 0x13a   :  { %v24_v18 = vmul.f32 0.6931472, %v62_v17 }
 0x13c   :  { %v28_v20 = vmul.f32 32.0, %v24_v18  ;;  %v40_v21 = vsub.f32 %v39_v19, %v24_v18 }
 0x13e   :  { %v29_v22 = vsub.f32 %v27_v16, %v28_v20  ;;  %v41_v24 = vmul.f32 -0.9483871, %v40_v21 }
 0x140   :  { %v42_v23 = vmul.f32 0.0016129032, %v29_v22 }
 0x142   :  { %v43_v25 = vsub.f32 %v41_v24, %v42_v23 }
 0x144   :  { %52 = vst.msk [vmem:[%s94_s2] sm:$0xff] %vm51_vm2, %v43_v25 }

</bundles_post_ra>
